<compile_context>
chip_gen: v7x
topology: tpu7x:2x2x1
jax: 0.10.0
libtpu: 0.0.40
codegen_flags: <defaults>
</compile_context>

<pallas_src>
import functools

import jax
import jax.numpy as jnp
from jax.experimental import pallas as pl
from jax.experimental.pallas import tpu as pltpu

# ---------------- module constants (from __init__) ----------------
NODE_NUM = (358, 307, 883, 170)
NODE_ALL = sum(NODE_NUM)            # 1718
N_NODE = 4
REGION_NUM = 50 * 4                 # 200
LAYER_TOTAL = 8                     # layer_num passed to __init__
INPUT_DIM = 32                      # small synthetic hidden size

_SUBLANE = 8


def _aligned_window(start, n, limit):
    """Round a static row range up to a sublane-aligned (start, rows) window.

    All arguments / results are trace-time Python ints, so the DMA below is
    fully static and aligned on both ends.  The table row counts are multiples
    of 8, so the rounded window never runs past the table.
    """
    a_start = (start // _SUBLANE) * _SUBLANE
    off = start - a_start
    rows = ((off + n + _SUBLANE - 1) // _SUBLANE) * _SUBLANE
    assert a_start + rows <= limit, "aligned prompt window exceeds table"
    return a_start, off, rows


# ---------------- Pallas kernel ----------------
def _concat_prompt_kernel(emb_s_ref, ws_hbm, emb_t_ref, wt_hbm,
                          out_s_ref, out_t_ref,
                          slab_s, slab_t, sem,
                          *, a_start_s, off_s, n_s, a_start_t, off_t, n_t):
    """Fused lane-concat for spatial + temporal prompts.

    1. DMA the needed (batch-invariant) prompt rows straight out of the full
       embedding tables in HBM into VMEM scratch (aligned static window).
    2. Build each concatenated tile in vregs and store it with a single
       full-block store per output (no partial-lane stores, no per-row loop).
    """
    cp_s = pltpu.make_async_copy(
        ws_hbm.at[pl.ds(a_start_s, slab_s.shape[0]), :], slab_s, sem.at[0])
    cp_t = pltpu.make_async_copy(
        wt_hbm.at[pl.ds(a_start_t, slab_t.shape[0]), :], slab_t, sem.at[1])
    cp_s.start()
    cp_t.start()
    cp_s.wait()
    cp_t.wait()

    b = out_s_ref.shape[0]
    dw = slab_s.shape[-1]

    w_s = slab_s[pl.ds(off_s, n_s), :]          # static sublane slice in VMEM
    w_t = slab_t[pl.ds(off_t, n_t), :]

    out_s_ref[...] = jnp.concatenate(
        [emb_s_ref[...], jnp.broadcast_to(w_s[None, :, :], (b, n_s, dw))],
        axis=-1)
    out_t_ref[...] = jnp.concatenate(
        [emb_t_ref[...], jnp.broadcast_to(w_t[None, :, :], (b, n_t, dw))],
        axis=-1)


def concat_prompt(emb_s, weight_s_table, emb_t, weight_t_table,
                  start_s, n_s, start_t, n_t):
    """Grid-free pallas_call: tiny operands, single invocation.

    The full embedding tables stay in HBM (memory_space=pl.ANY); only the
    needed rows are DMA'd inside the kernel.
    """
    B, Ns, De = emb_s.shape
    _, Nt, _ = emb_t.shape
    assert Ns == n_s and Nt == n_t
    assert emb_s.dtype == weight_s_table.dtype == weight_t_table.dtype
    Dw = weight_s_table.shape[-1]
    dtype = emb_s.dtype

    a_start_s, off_s, rows_s = _aligned_window(start_s, n_s, weight_s_table.shape[0])
    a_start_t, off_t, rows_t = _aligned_window(start_t, n_t, weight_t_table.shape[0])

    kernel = functools.partial(
        _concat_prompt_kernel,
        a_start_s=a_start_s, off_s=off_s, n_s=n_s,
        a_start_t=a_start_t, off_t=off_t, n_t=n_t)

    itemsize = jnp.dtype(dtype).itemsize
    bytes_accessed = itemsize * (
        B * Ns * De + B * Nt * De                     # embedding reads
        + (rows_s + rows_t) * Dw                      # prompt-table reads (in-kernel DMA)
        + B * Ns * (De + Dw) + B * Nt * (De + Dw))    # output writes

    vmem_spec = pl.BlockSpec(memory_space=pltpu.MemorySpace.VMEM)
    hbm_spec = pl.BlockSpec(memory_space=pl.ANY)

    # TODO(synk): at production sizes (large B / all layers at once) add a 1-D
    # parallel grid over B or N-tiles so both v7x TensorCores participate;
    # at this toy size the per-step grid overhead would dominate.
    return pl.pallas_call(
        kernel,
        out_shape=(
            jax.ShapeDtypeStruct((B, Ns, De + Dw), dtype),
            jax.ShapeDtypeStruct((B, Nt, De + Dw), dtype),
        ),
        in_specs=[vmem_spec, hbm_spec, vmem_spec, hbm_spec],
        out_specs=(vmem_spec, vmem_spec),
        scratch_shapes=[
            pltpu.VMEM((rows_s, Dw), dtype),
            pltpu.VMEM((rows_t, Dw), dtype),
            pltpu.SemaphoreType.DMA((2,)),
        ],
        cost_estimate=pl.CostEstimate(
            flops=0, transcendentals=0, bytes_accessed=int(bytes_accessed)),
    )(emb_s, weight_s_table, emb_t, weight_t_table)


# ---------------- parameters (deterministic init) ----------------
def init_params(key, input_dim=INPUT_DIM, layer_num=LAYER_TOTAL):
    k1, k2, k3 = jax.random.split(key, 3)
    params = {
        "weight_s": jax.random.normal(k1, (NODE_ALL * layer_num, input_dim), jnp.float32),
        "weight_t": jax.random.normal(k2, (N_NODE * 12 * layer_num, input_dim), jnp.float32),
        "wcity_s": jax.random.normal(k3, (REGION_NUM * layer_num, input_dim), jnp.float32),
        # linear_spatial / linear_temporal / linear_weight_spatial /
        # linear_weight_temporal exist in __init__ but are never used in forward.
    }
    return params


# ---------------- forward (glue + kernel) ----------------
def forward(params, embedding_s, embedding_t, city, region, layer_num):
    """city: python list of ints (all equal — required by torch.stack in the
    original, since per-city arange lengths differ); region: (B, R) int array
    (only feeds the dead wcity_s lookup); layer_num: python int."""
    assert len(set(int(c) for c in city)) == 1, (
        "original module requires all batch entries to share a city")
    c = int(city[0])

    prefix = [0]
    for n in NODE_NUM:
        prefix.append(prefix[-1] + n)

    # city_s / city_t are contiguous aranges with trace-time-known bounds, so
    # the "embedding lookup" is a static contiguous row window of each table,
    # DMA'd directly from HBM inside the kernel (no wrapper-side slice op).
    start_s = prefix[c] + NODE_ALL * layer_num
    n_s = NODE_NUM[c]
    start_t = 12 * c + 12 * layer_num
    n_t = 12

    # TODO(synk): the original forward also computes
    # wcity_s = self.wcity_s(region + 50*city[0] + region_num*layer_num)
    # but never uses or returns it (dead compute) — omitted.
    del region

    return concat_prompt(embedding_s, params["weight_s"],
                         embedding_t, params["weight_t"],
                         start_s, n_s, start_t, n_t)


# ---------------- pure-JAX reference for verification ----------------
def forward_ref(params, embedding_s, embedding_t, city, region, layer_num):
    prefix = [0]
    for n in NODE_NUM:
        prefix.append(prefix[-1] + n)
    city_s = jnp.stack(
        [jnp.arange(prefix[c], prefix[c + 1], dtype=jnp.int32) for c in city], axis=0
    ) + NODE_ALL * layer_num
    city_t = jnp.stack(
        [jnp.arange(12 * c, 12 * (c + 1), dtype=jnp.int32) for c in city], axis=0
    ) + 12 * layer_num
    w_s = jnp.take(params["weight_s"], city_s, axis=0)
    w_t = jnp.take(params["weight_t"], city_t, axis=0)
    return (jnp.concatenate([embedding_s, w_s], axis=-1),
            jnp.concatenate([embedding_t, w_t], axis=-1))


if __name__ == "__main__":
    key = jax.random.PRNGKey(0)
    kp, k1, k2, k3 = jax.random.split(key, 4)

    params = init_params(kp)

    B = 2
    city = [3, 3]                       # all batch entries share a city (stack constraint)
    n_c = NODE_NUM[city[0]]             # 170 spatial nodes for city 3
    layer_idx = 2                       # layer index in [0, LAYER_TOTAL)

    embedding_s = jax.random.normal(k1, (B, n_c, INPUT_DIM), jnp.float32)
    embedding_t = jax.random.normal(k2, (B, 12, INPUT_DIM), jnp.float32)
    region = jax.random.randint(k3, (B, 50), 0, 50, dtype=jnp.int32)

    out_s, out_t = forward(params, embedding_s, embedding_t, city, region, layer_idx)
    jax.block_until_ready((out_s, out_t))

    ref_s, ref_t = forward_ref(params, embedding_s, embedding_t, city, region, layer_idx)
    assert out_s.shape == (B, n_c, 2 * INPUT_DIM) and out_t.shape == (B, 12, 2 * INPUT_DIM)
    assert jnp.allclose(out_s, ref_s) and jnp.allclose(out_t, ref_t)

    print("KERNEL_OK")
</pallas_src>

<mosaic_0001>
module attributes {stable_mosaic.version = 11 : i64} {
  func.func @_concat_prompt_kernel(%arg0: memref<2x170x32xf32, #tpu.memory_space<vmem>>, %arg1: memref<13744x32xf32, #tpu.memory_space<any>>, %arg2: memref<2x12x32xf32, #tpu.memory_space<vmem>>, %arg3: memref<384x32xf32, #tpu.memory_space<any>>, %arg4: memref<2x170x64xf32, #tpu.memory_space<vmem>>, %arg5: memref<2x12x64xf32, #tpu.memory_space<vmem>>, %arg6: memref<176x32xf32, #tpu.memory_space<vmem>>, %arg7: memref<16x32xf32, #tpu.memory_space<vmem>>, %arg8: memref<2x!tpu.dma_semaphore, #tpu.memory_space<semaphore_mem>>) attributes {dimension_semantics = [], scalar_prefetch = 0 : i64, scratch_operands = 3 : i64, tpu.core_type = #tpu.core_type<tc>} {
    %c0_i32 = arith.constant 0 : i32
    %c4984_i32 = arith.constant 4984 : i32
    %c0_i32_0 = arith.constant 0 : i32
    %0 = tpu.memref_slice %arg1[%c4984_i32, %c0_i32_0] : memref<13744x32xf32, #tpu.memory_space<any>> -> memref<176x32xf32, #tpu.memory_space<any>>
    %1 = tpu.memref_slice %arg8[%c0_i32] : memref<2x!tpu.dma_semaphore, #tpu.memory_space<semaphore_mem>> -> memref<1x!tpu.dma_semaphore, #tpu.memory_space<semaphore_mem>>
    %2 = tpu.memref_squeeze %1 : memref<1x!tpu.dma_semaphore, #tpu.memory_space<semaphore_mem>> -> memref<!tpu.dma_semaphore, #tpu.memory_space<semaphore_mem>>
    tpu.enqueue_dma source(%0 : memref<176x32xf32, #tpu.memory_space<any>>) target(%arg6 : memref<176x32xf32, #tpu.memory_space<vmem>>) target_semaphore(%2 : memref<!tpu.dma_semaphore, #tpu.memory_space<semaphore_mem>>)
    %c1_i32 = arith.constant 1 : i32
    %c56_i32 = arith.constant 56 : i32
    %c0_i32_1 = arith.constant 0 : i32
    %3 = tpu.memref_slice %arg3[%c56_i32, %c0_i32_1] : memref<384x32xf32, #tpu.memory_space<any>> -> memref<16x32xf32, #tpu.memory_space<any>>
    %4 = tpu.memref_slice %arg8[%c1_i32] : memref<2x!tpu.dma_semaphore, #tpu.memory_space<semaphore_mem>> -> memref<1x!tpu.dma_semaphore, #tpu.memory_space<semaphore_mem>>
    %5 = tpu.memref_squeeze %4 : memref<1x!tpu.dma_semaphore, #tpu.memory_space<semaphore_mem>> -> memref<!tpu.dma_semaphore, #tpu.memory_space<semaphore_mem>>
    tpu.enqueue_dma source(%3 : memref<16x32xf32, #tpu.memory_space<any>>) target(%arg7 : memref<16x32xf32, #tpu.memory_space<vmem>>) target_semaphore(%5 : memref<!tpu.dma_semaphore, #tpu.memory_space<semaphore_mem>>)
    %c0_i32_2 = arith.constant 0 : i32
    %c4984_i32_3 = arith.constant 4984 : i32
    %c0_i32_4 = arith.constant 0 : i32
    %6 = tpu.memref_slice %arg1[%c4984_i32_3, %c0_i32_4] : memref<13744x32xf32, #tpu.memory_space<any>> -> memref<176x32xf32, #tpu.memory_space<any>>
    %7 = tpu.memref_slice %arg8[%c0_i32_2] : memref<2x!tpu.dma_semaphore, #tpu.memory_space<semaphore_mem>> -> memref<1x!tpu.dma_semaphore, #tpu.memory_space<semaphore_mem>>
    %8 = tpu.memref_squeeze %7 : memref<1x!tpu.dma_semaphore, #tpu.memory_space<semaphore_mem>> -> memref<!tpu.dma_semaphore, #tpu.memory_space<semaphore_mem>>
    tpu.wait_dma2 semaphore(%8 : memref<!tpu.dma_semaphore, #tpu.memory_space<semaphore_mem>>) src(%6 : memref<176x32xf32, #tpu.memory_space<any>>) dst(%arg6 : memref<176x32xf32, #tpu.memory_space<vmem>>)
    %c1_i32_5 = arith.constant 1 : i32
    %c56_i32_6 = arith.constant 56 : i32
    %c0_i32_7 = arith.constant 0 : i32
    %9 = tpu.memref_slice %arg3[%c56_i32_6, %c0_i32_7] : memref<384x32xf32, #tpu.memory_space<any>> -> memref<16x32xf32, #tpu.memory_space<any>>
    %10 = tpu.memref_slice %arg8[%c1_i32_5] : memref<2x!tpu.dma_semaphore, #tpu.memory_space<semaphore_mem>> -> memref<1x!tpu.dma_semaphore, #tpu.memory_space<semaphore_mem>>
    %11 = tpu.memref_squeeze %10 : memref<1x!tpu.dma_semaphore, #tpu.memory_space<semaphore_mem>> -> memref<!tpu.dma_semaphore, #tpu.memory_space<semaphore_mem>>
    tpu.wait_dma2 semaphore(%11 : memref<!tpu.dma_semaphore, #tpu.memory_space<semaphore_mem>>) src(%9 : memref<16x32xf32, #tpu.memory_space<any>>) dst(%arg7 : memref<16x32xf32, #tpu.memory_space<vmem>>)
    %c0 = arith.constant 0 : index
    %c0_8 = arith.constant 0 : index
    %12 = vector.load %arg6[%c0, %c0_8] : memref<176x32xf32, #tpu.memory_space<vmem>>, vector<170x32xf32>
    %c4 = arith.constant 4 : index
    %c0_9 = arith.constant 0 : index
    %13 = vector.load %arg7[%c4, %c0_9] : memref<16x32xf32, #tpu.memory_space<vmem>>, vector<12x32xf32>
    %c0_10 = arith.constant 0 : index
    %c0_11 = arith.constant 0 : index
    %c0_12 = arith.constant 0 : index
    %14 = vector.load %arg0[%c0_10, %c0_11, %c0_12] : memref<2x170x32xf32, #tpu.memory_space<vmem>>, vector<2x170x32xf32>
    %15 = vector.shape_cast %12 : vector<170x32xf32> to vector<1x170x32xf32>
    %16 = vector.shape_cast %15 : vector<1x170x32xf32> to vector<1x170x32xf32>
    %17 = vector.broadcast %16 : vector<1x170x32xf32> to vector<2x170x32xf32>
    %18 = tpu.concatenate %14, %17 in 2 : vector<2x170x32xf32>, vector<2x170x32xf32> -> vector<2x170x64xf32>
    %c0_13 = arith.constant 0 : index
    %c0_14 = arith.constant 0 : index
    %c0_15 = arith.constant 0 : index
    %19 = vector.load %arg4[%c0_13, %c0_14, %c0_15] : memref<2x170x64xf32, #tpu.memory_space<vmem>>, vector<2x170x64xf32>
    tpu.vector_store %arg4[%c0_13, %c0_14, %c0_15], %18 {strides = array<i32>} : memref<2x170x64xf32, #tpu.memory_space<vmem>>, vector<2x170x64xf32>,
    %c0_16 = arith.constant 0 : index
    %c0_17 = arith.constant 0 : index
    %c0_18 = arith.constant 0 : index
    %20 = vector.load %arg2[%c0_16, %c0_17, %c0_18] : memref<2x12x32xf32, #tpu.memory_space<vmem>>, vector<2x12x32xf32>
    %21 = vector.shape_cast %13 : vector<12x32xf32> to vector<1x12x32xf32>
    %22 = vector.shape_cast %21 : vector<1x12x32xf32> to vector<1x12x32xf32>
    %23 = vector.broadcast %22 : vector<1x12x32xf32> to vector<2x12x32xf32>
    %24 = tpu.concatenate %20, %23 in 2 : vector<2x12x32xf32>, vector<2x12x32xf32> -> vector<2x12x64xf32>
    %c0_19 = arith.constant 0 : index
    %c0_20 = arith.constant 0 : index
    %c0_21 = arith.constant 0 : index
    %25 = vector.load %arg5[%c0_19, %c0_20, %c0_21] : memref<2x12x64xf32, #tpu.memory_space<vmem>>, vector<2x12x64xf32>
    tpu.vector_store %arg5[%c0_19, %c0_20, %c0_21], %24 {strides = array<i32>} : memref<2x12x64xf32, #tpu.memory_space<vmem>>, vector<2x12x64xf32>,
    return
  }
}

</mosaic_0001>

<bundles_post_ra>
// kernel: tpu_custom_call.1
= control target key start
LH: loop header
LB: loop body
LE: loop exit
PB: predicated region body
PF: predicated region fallthrough
CT: control target
= control target key end

     0   :  { %s997_s0 = inlined_call_operand.vmem [shape: f32[2,170,32], index: 0, kind: input, shape index: {}]   ;;  %s998_s1 = inlined_call_operand.vmem [shape: f32[13744,32], index: 1, kind: input, shape index: {}]   ;;  %s999_s2 = inlined_call_operand.vmem [shape: f32[2,12,32], index: 2, kind: input, shape index: {}]   ;;  %s1000_s3 = inlined_call_operand.vmem [shape: f32[384,32], index: 3, kind: input, shape index: {}]   ;;  %s1001_s4 = inlined_call_operand.vmem [shape: f32[2,170,64], index: 4, kind: output, shape index: {0}]   ;;  %s1002_s5 = inlined_call_operand.vmem [shape: f32[2,12,64], index: 5, kind: output, shape index: {1}]  }
   0x1   :  { %v457_v0 = vld [vmem:[%s998_s1 + $0x1378] sm:$0xff]  ;;  %v458_v1 = vld [vmem:[%s998_s1 + $0x1380] sm:$0xff]  ;;  %v459_v2 = vld [vmem:[%s998_s1 + $0x1388] sm:$0xff] }
   0x2   :  { %49 = vst [vmem:[#allocation2] sm:$0xff] %v457_v0  ;;  %51 = vst [vmem:[#allocation2 + $0x8] sm:$0xff] %v458_v1  ;;  %v460_v3 = vld [vmem:[%s998_s1 + $0x1390] sm:$0xff]  ;;  %v461_v4 = vld [vmem:[%s998_s1 + $0x1398] sm:$0xff] }
   0x3   :  { %53 = vst [vmem:[#allocation2 + $0x10] sm:$0xff] %v459_v2  ;;  %v462_v5 = vld [vmem:[%s998_s1 + $0x13a0] sm:$0xff]  ;;  %55 = vst [vmem:[#allocation2 + $0x18] sm:$0xff] %v460_v3  ;;  %v463_v6 = vld [vmem:[%s998_s1 + $0x13a8] sm:$0xff] }
   0x4   :  { %57 = vst [vmem:[#allocation2 + $0x20] sm:$0xff] %v461_v4  ;;  %59 = vst [vmem:[#allocation2 + $0x28] sm:$0xff] %v462_v5  ;;  %v464_v7 = vld [vmem:[%s998_s1 + $0x13b0] sm:$0xff]  ;;  %v465_v8 = vld [vmem:[%s998_s1 + $0x13b8] sm:$0xff] }
   0x5   :  { %61 = vst [vmem:[#allocation2 + $0x30] sm:$0xff] %v463_v6  ;;  %63 = vst [vmem:[#allocation2 + $0x38] sm:$0xff] %v464_v7  ;;  %v466_v9 = vld [vmem:[%s998_s1 + $0x13c0] sm:$0xff]  ;;  %v467_v10 = vld [vmem:[%s998_s1 + $0x13c8] sm:$0xff] }
   0x6   :  { %65 = vst [vmem:[#allocation2 + $0x40] sm:$0xff] %v465_v8  ;;  %v468_v11 = vld [vmem:[%s998_s1 + $0x13d0] sm:$0xff]  ;;  %67 = vst [vmem:[#allocation2 + $0x48] sm:$0xff] %v466_v9  ;;  %v469_v12 = vld [vmem:[%s998_s1 + $0x13d8] sm:$0xff] }
   0x7   :  { %69 = vst [vmem:[#allocation2 + $0x50] sm:$0xff] %v467_v10  ;;  %71 = vst [vmem:[#allocation2 + $0x58] sm:$0xff] %v468_v11  ;;  %v470_v13 = vld [vmem:[%s998_s1 + $0x13e0] sm:$0xff]  ;;  %v471_v14 = vld [vmem:[%s998_s1 + $0x13e8] sm:$0xff] }
   0x8   :  { %73 = vst [vmem:[#allocation2 + $0x60] sm:$0xff] %v469_v12  ;;  %75 = vst [vmem:[#allocation2 + $0x68] sm:$0xff] %v470_v13  ;;  %v472_v15 = vld [vmem:[%s998_s1 + $0x13f0] sm:$0xff]  ;;  %v473_v16 = vld [vmem:[%s998_s1 + $0x13f8] sm:$0xff] }
   0x9   :  { %77 = vst [vmem:[#allocation2 + $0x70] sm:$0xff] %v471_v14  ;;  %v474_v17 = vld [vmem:[%s998_s1 + $0x1400] sm:$0xff]  ;;  %79 = vst [vmem:[#allocation2 + $0x78] sm:$0xff] %v472_v15  ;;  %v475_v18 = vld [vmem:[%s998_s1 + $0x1408] sm:$0xff] }
   0xa   :  { %81 = vst [vmem:[#allocation2 + $0x80] sm:$0xff] %v473_v16  ;;  %83 = vst [vmem:[#allocation2 + $0x88] sm:$0xff] %v474_v17  ;;  %v476_v19 = vld [vmem:[%s998_s1 + $0x1410] sm:$0xff]  ;;  %v477_v20 = vld [vmem:[%s998_s1 + $0x1418] sm:$0xff] }
   0xb   :  { %85 = vst [vmem:[#allocation2 + $0x90] sm:$0xff] %v475_v18  ;;  %87 = vst [vmem:[#allocation2 + $0x98] sm:$0xff] %v476_v19  ;;  %v478_v21 = vld [vmem:[%s998_s1 + $0x1420] sm:$0xff] }
   0xc   :  { %89 = vst [vmem:[#allocation2 + $0xa0] sm:$0xff] %v477_v20  ;;  %91 = vst [vmem:[#allocation2 + $0xa8] sm:$0xff] %v478_v21 }
   0xd   :  { %99 = vsyncadd [#allocation4], 2816  ;;  %v480_v22 = vld [vmem:[%s1000_s3 + $0x38] sm:$0xff]  ;;  %v481_v23 = vld [vmem:[%s1000_s3 + $0x40] sm:$0xff] }
   0xe   :  { %135 = vst [vmem:[#allocation3] sm:$0xff] %v480_v22  ;;  %137 = vst [vmem:[#allocation3 + $0x8] sm:$0xff] %v481_v23 }
   0xf   :  { %145 = vsyncadd [#allocation4 + $0x1], 256 }
  0x10   :  { %486 = dma.done.wait [#allocation4], 2816 }
  0x11   :  { %487 = vsyncadd [#allocation4], 4294964480 }
  0x12   :  { %488 = dma.done.wait [#allocation4 + $0x1], 256 }
  0x13   :  { %489 = vsyncadd [#allocation4 + $0x1], 4294967040  ;;  %v154_v24 = vld [vmem:[#allocation2 + $0x10] sm:$0xff]  ;;  %v152_v25 = vld [vmem:[#allocation2] sm:$0xff]  ;;  %s490_s1 = smov 32   ;;  %vm308_vm0 = vcmask 261120  }
  0x14   :  { %246 = vrot.lane.b32.xlu1 %v154_v24, %s490_s1  ;;  %242 = vrot.lane.b32.xlu0 %v152_v25, %s490_s1  ;;  %v155_v26 = vld [vmem:[#allocation2 + $0x18] sm:$0xff]  ;;  %v153_v27 = vld [vmem:[#allocation2 + $0x8] sm:$0xff]  ;;  %v156_v29 = vld [vmem:[#allocation2 + $0x20] sm:$0xff]  ;;  %vm353_vm1 = vcmask 523264   ;;  %vm375_vm2 = vcmask 517120   ;;  %vm416_vm3 = vcmask 519168  }
  0x15   :  { %v157_v28 = vld [vmem:[#allocation2 + $0x28] sm:$0xff]  ;;  %v159_v30 = vld [vmem:[#allocation2 + $0x38] sm:$0xff]  ;;  %v158_v31 = vld [vmem:[#allocation2 + $0x30] sm:$0xff] }
  0x16   :  { %v161_v32 = vld [vmem:[#allocation2 + $0x48] sm:$0xff]  ;;  %v160_v33 = vld [vmem:[#allocation2 + $0x40] sm:$0xff]  ;;  %v163_v34 = vld [vmem:[#allocation2 + $0x58] sm:$0xff] }
  0x17   :  { %v162_v35 = vld [vmem:[#allocation2 + $0x50] sm:$0xff]  ;;  %v165_v36 = vld [vmem:[#allocation2 + $0x68] sm:$0xff]  ;;  %v164_v37 = vld [vmem:[#allocation2 + $0x60] sm:$0xff] }
  0x18   :  { %248 = vrot.lane.b32.xlu1 %v155_v26, %s490_s1  ;;  %244 = vrot.lane.b32.xlu0 %v153_v27, %s490_s1  ;;  %v167_v38 = vld [vmem:[#allocation2 + $0x78] sm:$0xff]  ;;  %v166_v39 = vld [vmem:[#allocation2 + $0x70] sm:$0xff]  ;;  %v169_v40 = vld [vmem:[#allocation2 + $0x88] sm:$0xff] }
  0x19   :  { %v168_v41 = vld [vmem:[#allocation2 + $0x80] sm:$0xff]  ;;  %v171_v42 = vld [vmem:[#allocation2 + $0x98] sm:$0xff]  ;;  %v170_v43 = vld [vmem:[#allocation2 + $0x90] sm:$0xff] }
  0x1a   :  { %v173_v44 = vld [vmem:[#allocation2 + $0xa8] sm:$0x3]  ;;  %v172_v45 = vld [vmem:[#allocation2 + $0xa0] sm:$0xff]  ;;  %v175_v46 = vld [vmem:[#allocation3 + $0xc] sm:$0xf] }
  0x1b   :  { %v174_v47 = vld [vmem:[#allocation3 + $0x4] sm:$0xff]  ;;  %v200_v49 = vld [vmem:[%s997_s0 + $0xc0] sm:$0xff]  ;;  %v201_v59 = vld [vmem:[%s997_s0 + $0xc8] sm:$0xff] }
  0x1c   :  { %252 = vrot.lane.b32.xlu1 %v157_v28, %s490_s1  ;;  %250 = vrot.lane.b32.xlu0 %v156_v29, %s490_s1  ;;  %v178_v48 = vld [vmem:[%s997_s0 + $0x10] sm:$0xff]  ;;  %v176_v50 = vld [vmem:[%s997_s0] sm:$0xff] }
  0x1d   :  { %v198_v51 = vld [vmem:[%s997_s0 + $0xb0] sm:$0xff]  ;;  %v179_v58 = vld [vmem:[%s997_s0 + $0x18] sm:$0xff]  ;;  %v177_v60 = vld [vmem:[%s997_s0 + $0x8] sm:$0xff] }
  0x1e   :  { %v199_v61 = vld [vmem:[%s997_s0 + $0xb8] sm:$0xff]  ;;  %v181_v4 = vld [vmem:[%s997_s0 + $0x28] sm:$0xff]  ;;  %v180_v6 = vld [vmem:[%s997_s0 + $0x20] sm:$0xff] }
  0x1f   :  { %v203_v5 = vld [vmem:[%s997_s0 + $0xd8] sm:$0xff]  ;;  %v202_v7 = vld [vmem:[%s997_s0 + $0xd0] sm:$0xff]  ;;  %v205_v15 = vld [vmem:[%s997_s0 + $0xe8] sm:$0xff] }
  0x20   :  { %256 = vrot.lane.b32.xlu1 %v159_v30, %s490_s1  ;;  %254 = vrot.lane.b32.xlu0 %v158_v31, %s490_s1  ;;  %v183_v14 = vld [vmem:[%s997_s0 + $0x38] sm:$0xff]  ;;  %v182_v16 = vld [vmem:[%s997_s0 + $0x30] sm:$0xff] }
  0x21   :  { %v204_v17 = vld [vmem:[%s997_s0 + $0xe0] sm:$0xff]  ;;  %v185_v24 = vld [vmem:[%s997_s0 + $0x48] sm:$0xff]  ;;  %v207_v25 = vld [vmem:[%s997_s0 + $0xf8] sm:$0xff] }
  0x22   :  { %v184_v26 = vld [vmem:[%s997_s0 + $0x40] sm:$0xff]  ;;  %v206_v27 = vld [vmem:[%s997_s0 + $0xf0] sm:$0xff] }
  0x24   :  { %260 = vrot.lane.b32.xlu1 %v161_v32, %s490_s1  ;;  %258 = vrot.lane.b32.xlu0 %v160_v33, %s490_s1 }
  0x28   :  { %264 = vrot.lane.b32.xlu1 %v163_v34, %s490_s1  ;;  %262 = vrot.lane.b32.xlu0 %v162_v35, %s490_s1  ;;  %v187_v34 = vld [vmem:[%s997_s0 + $0x58] sm:$0xff]  ;;  %v209_v35 = vld [vmem:[%s997_s0 + $0x108] sm:$0xff] }
  0x2c   :  { %268 = vrot.lane.b32.xlu1 %v165_v36, %s490_s1  ;;  %266 = vrot.lane.b32.xlu0 %v164_v37, %s490_s1  ;;  %v186_v36 = vld [vmem:[%s997_s0 + $0x50] sm:$0xff]  ;;  %v208_v37 = vld [vmem:[%s997_s0 + $0x100] sm:$0xff] }
  0x30   :  { %272 = vrot.lane.b32.xlu1 %v167_v38, %s490_s1  ;;  %270 = vrot.lane.b32.xlu0 %v166_v39, %s490_s1 }
  0x34   :  { %276 = vrot.lane.b32.xlu1 %v169_v40, %s490_s1  ;;  %274 = vrot.lane.b32.xlu0 %v168_v41, %s490_s1 }
  0x38   :  { %280 = vrot.lane.b32.xlu1 %v171_v42, %s490_s1  ;;  %278 = vrot.lane.b32.xlu0 %v170_v43, %s490_s1 }
  0x3c   :  { %284 = vrot.lane.b32.xlu1 %v173_v44, %s490_s1  ;;  %282 = vrot.lane.b32.xlu0 %v172_v45, %s490_s1  ;;  %v189_v44 = vld [vmem:[%s997_s0 + $0x68] sm:$0xff]  ;;  %v211_v45 = vld [vmem:[%s997_s0 + $0x118] sm:$0xff] }
  0x40   :  { %407 = vrot.lane.b32.xlu1 %v175_v46, %s490_s1  ;;  %405 = vrot.lane.b32.xlu0 %v174_v47, %s490_s1  ;;  %v188_v46 = vld [vmem:[%s997_s0 + $0x60] sm:$0xff]  ;;  %v210_v47 = vld [vmem:[%s997_s0 + $0x110] sm:$0xff] }
  0x86   :  { %v247_v52 = vpop.permute.xlu1 %246  ;;  %v243_v53 = vpop.permute.xlu0 %242 }
  0x87   :  { %v311_v54 = vsel %vm308_vm0, %v178_v48, %v247_v52  ;;  %v333_v55 = vsel %vm308_vm0, %v200_v49, %v247_v52  ;;  %v309_v56 = vsel %vm308_vm0, %v176_v50, %v243_v53  ;;  %v331_v57 = vsel %vm308_vm0, %v198_v51, %v243_v53 }
  0x88   :  { %356 = vst.msk [vmem:[%s1001_s4 + $0x10] sm:$0xff] %vm353_vm1, %v311_v54  ;;  %379 = vst.msk [vmem:[%s1001_s4 + $0xc0] sm:$0xff] %vm353_vm1, %v333_v55  ;;  %v191_v54 = vld [vmem:[%s997_s0 + $0x78] sm:$0xff]  ;;  %v213_v55 = vld [vmem:[%s997_s0 + $0x128] sm:$0xff] }
  0x89   :  { %354 = vst.msk [vmem:[%s1001_s4] sm:$0xff] %vm353_vm1, %v309_v56  ;;  %377 = vst.msk [vmem:[%s1001_s4 + $0xb0] sm:$0xff] %vm353_vm1, %v331_v57  ;;  %v190_v56 = vld [vmem:[%s997_s0 + $0x70] sm:$0xff]  ;;  %v212_v57 = vld [vmem:[%s997_s0 + $0x120] sm:$0xff] }
  0x8a   :  { %v249_v62 = vpop.permute.xlu1 %248  ;;  %v245_v63 = vpop.permute.xlu0 %244 }
  0x8b   :  { %v312_v0 = vsel %vm308_vm0, %v179_v58, %v249_v62  ;;  %v334_v1 = vsel %vm308_vm0, %v201_v59, %v249_v62  ;;  %v310_v2 = vsel %vm308_vm0, %v177_v60, %v245_v63  ;;  %v332_v3 = vsel %vm308_vm0, %v199_v61, %v245_v63 }
  0x8c   :  { %357 = vst.msk [vmem:[%s1001_s4 + $0x18] sm:$0xff] %vm353_vm1, %v312_v0  ;;  %380 = vst.msk [vmem:[%s1001_s4 + $0xc8] sm:$0xff] %vm353_vm1, %v334_v1  ;;  %v193_v0 = vld [vmem:[%s997_s0 + $0x88] sm:$0xff]  ;;  %v215_v1 = vld [vmem:[%s997_s0 + $0x138] sm:$0xff] }
  0x8d   :  { %355 = vst.msk [vmem:[%s1001_s4 + $0x8] sm:$0xff] %vm353_vm1, %v310_v2  ;;  %378 = vst.msk [vmem:[%s1001_s4 + $0xb8] sm:$0xff] %vm353_vm1, %v332_v3  ;;  %v192_v2 = vld [vmem:[%s997_s0 + $0x80] sm:$0xff]  ;;  %v214_v3 = vld [vmem:[%s997_s0 + $0x130] sm:$0xff] }
  0x8e   :  { %v253_v8 = vpop.permute.xlu1 %252  ;;  %v251_v9 = vpop.permute.xlu0 %250 }
  0x8f   :  { %v314_v10 = vsel %vm308_vm0, %v181_v4, %v253_v8  ;;  %v336_v11 = vsel %vm308_vm0, %v203_v5, %v253_v8  ;;  %v313_v12 = vsel %vm308_vm0, %v180_v6, %v251_v9  ;;  %v335_v13 = vsel %vm308_vm0, %v202_v7, %v251_v9 }
  0x90   :  { %359 = vst.msk [vmem:[%s1001_s4 + $0x28] sm:$0xff] %vm353_vm1, %v314_v10  ;;  %382 = vst.msk [vmem:[%s1001_s4 + $0xd8] sm:$0xff] %vm353_vm1, %v336_v11  ;;  %v195_v10 = vld [vmem:[%s997_s0 + $0x98] sm:$0xff]  ;;  %v217_v11 = vld [vmem:[%s997_s0 + $0x148] sm:$0xff] }
  0x91   :  { %358 = vst.msk [vmem:[%s1001_s4 + $0x20] sm:$0xff] %vm353_vm1, %v313_v12  ;;  %381 = vst.msk [vmem:[%s1001_s4 + $0xd0] sm:$0xff] %vm353_vm1, %v335_v13  ;;  %v194_v12 = vld [vmem:[%s997_s0 + $0x90] sm:$0xff]  ;;  %v216_v13 = vld [vmem:[%s997_s0 + $0x140] sm:$0xff] }
  0x92   :  { %v257_v18 = vpop.permute.xlu1 %256  ;;  %v255_v19 = vpop.permute.xlu0 %254 }
  0x93   :  { %v316_v20 = vsel %vm308_vm0, %v183_v14, %v257_v18  ;;  %v338_v21 = vsel %vm308_vm0, %v205_v15, %v257_v18  ;;  %v315_v22 = vsel %vm308_vm0, %v182_v16, %v255_v19  ;;  %v337_v23 = vsel %vm308_vm0, %v204_v17, %v255_v19 }
  0x94   :  { %361 = vst.msk [vmem:[%s1001_s4 + $0x38] sm:$0xff] %vm353_vm1, %v316_v20  ;;  %384 = vst.msk [vmem:[%s1001_s4 + $0xe8] sm:$0xff] %vm353_vm1, %v338_v21  ;;  %v197_v20 = vld [vmem:[%s997_s0 + $0xa8] sm:$0x3]  ;;  %v219_v21 = vld [vmem:[%s997_s0 + $0x158] sm:$0x3] }
  0x95   :  { %360 = vst.msk [vmem:[%s1001_s4 + $0x30] sm:$0xff] %vm353_vm1, %v315_v22  ;;  %383 = vst.msk [vmem:[%s1001_s4 + $0xe0] sm:$0xff] %vm353_vm1, %v337_v23  ;;  %v196_v22 = vld [vmem:[%s997_s0 + $0xa0] sm:$0xff]  ;;  %v218_v23 = vld [vmem:[%s997_s0 + $0x150] sm:$0xff] }
  0x96   :  { %v261_v28 = vpop.permute.xlu1 %260  ;;  %v259_v29 = vpop.permute.xlu0 %258 }
  0x97   :  { %v318_v30 = vsel %vm308_vm0, %v185_v24, %v261_v28  ;;  %v340_v31 = vsel %vm308_vm0, %v207_v25, %v261_v28  ;;  %v317_v32 = vsel %vm308_vm0, %v184_v26, %v259_v29  ;;  %v339_v33 = vsel %vm308_vm0, %v206_v27, %v259_v29 }
  0x98   :  { %363 = vst.msk [vmem:[%s1001_s4 + $0x48] sm:$0xff] %vm353_vm1, %v318_v30  ;;  %386 = vst.msk [vmem:[%s1001_s4 + $0xf8] sm:$0xff] %vm353_vm1, %v340_v31  ;;  %v400_v30 = vld [vmem:[%s999_s2 + $0x8] sm:$0xf]  ;;  %v402_v31 = vld [vmem:[%s999_s2 + $0x18] sm:$0xf] }
  0x99   :  { %362 = vst.msk [vmem:[%s1001_s4 + $0x40] sm:$0xff] %vm353_vm1, %v317_v32  ;;  %385 = vst.msk [vmem:[%s1001_s4 + $0xf0] sm:$0xff] %vm353_vm1, %v339_v33  ;;  %v399_v32 = vld [vmem:[%s999_s2] sm:$0xff]  ;;  %v401_v33 = vld [vmem:[%s999_s2 + $0x10] sm:$0xff] }
  0x9a   :  { %v265_v38 = vpop.permute.xlu1 %264  ;;  %v263_v39 = vpop.permute.xlu0 %262 }
  0x9b   :  { %v320_v40 = vsel %vm308_vm0, %v187_v34, %v265_v38  ;;  %v342_v41 = vsel %vm308_vm0, %v209_v35, %v265_v38  ;;  %v319_v42 = vsel %vm308_vm0, %v186_v36, %v263_v39  ;;  %v341_v43 = vsel %vm308_vm0, %v208_v37, %v263_v39 }
  0x9c   :  { %365 = vst.msk [vmem:[%s1001_s4 + $0x58] sm:$0xff] %vm353_vm1, %v320_v40  ;;  %388 = vst.msk [vmem:[%s1001_s4 + $0x108] sm:$0xff] %vm353_vm1, %v342_v41 }
  0x9d   :  { %364 = vst.msk [vmem:[%s1001_s4 + $0x50] sm:$0xff] %vm353_vm1, %v319_v42  ;;  %387 = vst.msk [vmem:[%s1001_s4 + $0x100] sm:$0xff] %vm353_vm1, %v341_v43 }
  0x9e   :  { %v269_v48 = vpop.permute.xlu1 %268  ;;  %v267_v49 = vpop.permute.xlu0 %266 }
  0x9f   :  { %v322_v50 = vsel %vm308_vm0, %v189_v44, %v269_v48  ;;  %v344_v51 = vsel %vm308_vm0, %v211_v45, %v269_v48  ;;  %v321_v52 = vsel %vm308_vm0, %v188_v46, %v267_v49  ;;  %v343_v53 = vsel %vm308_vm0, %v210_v47, %v267_v49 }
  0xa0   :  { %367 = vst.msk [vmem:[%s1001_s4 + $0x68] sm:$0xff] %vm353_vm1, %v322_v50  ;;  %390 = vst.msk [vmem:[%s1001_s4 + $0x118] sm:$0xff] %vm353_vm1, %v344_v51 }
  0xa1   :  { %366 = vst.msk [vmem:[%s1001_s4 + $0x60] sm:$0xff] %vm353_vm1, %v321_v52  ;;  %389 = vst.msk [vmem:[%s1001_s4 + $0x110] sm:$0xff] %vm353_vm1, %v343_v53 }
  0xa2   :  { %v273_v58 = vpop.permute.xlu1 %272  ;;  %v271_v59 = vpop.permute.xlu0 %270 }
  0xa3   :  { %v324_v60 = vsel %vm308_vm0, %v191_v54, %v273_v58  ;;  %v346_v61 = vsel %vm308_vm0, %v213_v55, %v273_v58  ;;  %v323_v62 = vsel %vm308_vm0, %v190_v56, %v271_v59  ;;  %v345_v63 = vsel %vm308_vm0, %v212_v57, %v271_v59 }
  0xa4   :  { %369 = vst.msk [vmem:[%s1001_s4 + $0x78] sm:$0xff] %vm353_vm1, %v324_v60  ;;  %392 = vst.msk [vmem:[%s1001_s4 + $0x128] sm:$0xff] %vm353_vm1, %v346_v61 }
  0xa5   :  { %368 = vst.msk [vmem:[%s1001_s4 + $0x70] sm:$0xff] %vm353_vm1, %v323_v62  ;;  %391 = vst.msk [vmem:[%s1001_s4 + $0x120] sm:$0xff] %vm353_vm1, %v345_v63 }
  0xa6   :  { %v277_v4 = vpop.permute.xlu1 %276  ;;  %v275_v5 = vpop.permute.xlu0 %274 }
  0xa7   :  { %v326_v6 = vsel %vm308_vm0, %v193_v0, %v277_v4  ;;  %v348_v7 = vsel %vm308_vm0, %v215_v1, %v277_v4  ;;  %v325_v8 = vsel %vm308_vm0, %v192_v2, %v275_v5  ;;  %v347_v9 = vsel %vm308_vm0, %v214_v3, %v275_v5 }
  0xa8   :  { %371 = vst.msk [vmem:[%s1001_s4 + $0x88] sm:$0xff] %vm353_vm1, %v326_v6  ;;  %394 = vst.msk [vmem:[%s1001_s4 + $0x138] sm:$0xff] %vm353_vm1, %v348_v7 }
  0xa9   :  { %370 = vst.msk [vmem:[%s1001_s4 + $0x80] sm:$0xff] %vm353_vm1, %v325_v8  ;;  %393 = vst.msk [vmem:[%s1001_s4 + $0x130] sm:$0xff] %vm353_vm1, %v347_v9 }
  0xaa   :  { %v281_v14 = vpop.permute.xlu1 %280  ;;  %v279_v15 = vpop.permute.xlu0 %278 }
  0xab   :  { %v328_v16 = vsel %vm308_vm0, %v195_v10, %v281_v14  ;;  %v350_v17 = vsel %vm308_vm0, %v217_v11, %v281_v14  ;;  %v327_v18 = vsel %vm308_vm0, %v194_v12, %v279_v15  ;;  %v349_v19 = vsel %vm308_vm0, %v216_v13, %v279_v15 }
  0xac   :  { %373 = vst.msk [vmem:[%s1001_s4 + $0x98] sm:$0xff] %vm353_vm1, %v328_v16  ;;  %396 = vst.msk [vmem:[%s1001_s4 + $0x148] sm:$0xff] %vm353_vm1, %v350_v17 }
  0xad   :  { %372 = vst.msk [vmem:[%s1001_s4 + $0x90] sm:$0xff] %vm353_vm1, %v327_v18  ;;  %395 = vst.msk [vmem:[%s1001_s4 + $0x140] sm:$0xff] %vm353_vm1, %v349_v19 }
  0xae   :  { %v285_v24 = vpop.permute.xlu1 %284  ;;  %v283_v25 = vpop.permute.xlu0 %282 }
  0xaf   :  { %v330_v26 = vsel %vm308_vm0, %v197_v20, %v285_v24  ;;  %v352_v27 = vsel %vm308_vm0, %v219_v21, %v285_v24  ;;  %v329_v28 = vsel %vm308_vm0, %v196_v22, %v283_v25  ;;  %v351_v29 = vsel %vm308_vm0, %v218_v23, %v283_v25 }
  0xb0   :  { %376 = vst.msk [vmem:[%s1001_s4 + $0xa8] sm:$0x3] %vm375_vm2, %v330_v26  ;;  %398 = vst.msk [vmem:[%s1001_s4 + $0x158] sm:$0x3] %vm375_vm2, %v352_v27 }
  0xb1   :  { %374 = vst.msk [vmem:[%s1001_s4 + $0xa0] sm:$0xff] %vm353_vm1, %v329_v28  ;;  %397 = vst.msk [vmem:[%s1001_s4 + $0x150] sm:$0xff] %vm353_vm1, %v351_v29 }
  0xb2   :  { %v408_v34 = vpop.permute.xlu1 %407  ;;  %v406_v35 = vpop.permute.xlu0 %405 }
  0xb3   :  { %v412_v36 = vsel %vm308_vm0, %v400_v30, %v408_v34  ;;  %v414_v37 = vsel %vm308_vm0, %v402_v31, %v408_v34  ;;  %v411_v38 = vsel %vm308_vm0, %v399_v32, %v406_v35  ;;  %v413_v39 = vsel %vm308_vm0, %v401_v33, %v406_v35 }
  0xb4   :  { %417 = vst.msk [vmem:[%s1002_s5 + $0x8] sm:$0xf] %vm416_vm3, %v412_v36  ;;  %419 = vst.msk [vmem:[%s1002_s5 + $0x18] sm:$0xf] %vm416_vm3, %v414_v37 }
  0xb5   :  { %415 = vst.msk [vmem:[%s1002_s5] sm:$0xff] %vm353_vm1, %v411_v38  ;;  %418 = vst.msk [vmem:[%s1002_s5 + $0x10] sm:$0xff] %vm353_vm1, %v413_v39 }
  0xb6   :  { %428 = vsyncmov [#allocation4] }
  0xb9   :  { %s429_s3 = vpop.sfrf %428 }
  0xba   :  { %p483_p0 = scmp.ne.s32.totalorder %s429_s3, 0 }
  0xbc   :  { %433 = shalt.err (%p483_p0)  }
  0xbd   :  { %435 = vsyncmov [#allocation4 + $0x1] }
  0xc0   :  { %s436_s16 = vpop.sfrf %435 }
  0xc1   :  { %p484_p1 = scmp.ne.s32.totalorder %s436_s16, 0 }
  0xc3   :  { %440 = shalt.err (%p484_p1)  }

</bundles_post_ra>
